<compile_context>
chip_gen: v5e
topology: v5e:2x2
jax: 0.10.0
libtpu: 0.0.40
codegen_flags: <defaults>
</compile_context>

<pallas_src>
import functools
import math

import jax
import jax.numpy as jnp
from jax.experimental import pallas as pl
from jax.experimental.pallas import tpu as pltpu


def _round_up(x, m):
    return (x + m - 1) // m * m


# ----------------------------------------------------------------------------
# Fused single-step kernel: everything resident in VMEM, static unroll over
# groups: linear (MXU) -> dendrite leaky integration -> scaled accumulate.
# ----------------------------------------------------------------------------
def _dout_fused_kernel(x_ref, w_ref, sd_ref, z_ref, sd_out_ref, *,
                       n_groups, alpha, v_leak):
    # x_ref : (n, b_pad, cin_pad)     matmul dtype
    # w_ref : (n, cin_pad, cout_pad)  matmul dtype (pre-transposed weights)
    # sd_ref: (n, b_pad, cout_pad)    f32
    # z_ref : (b_pad, cout_pad)       f32
    # sd_out_ref: (n, b_pad, cout_pad) f32
    inv_n = 1.0 / n_groups
    acc = None
    for i in range(n_groups):  # small, static unroll
        i_syn = jnp.dot(x_ref[i], w_ref[i],
                        preferred_element_type=jnp.float32)
        v = sd_ref[i]
        v_new = v + alpha * (v_leak - v + i_syn)   # dendritic leaky integration
        sd_out_ref[i] = v_new
        acc = v_new if i == 0 else acc + inv_n * v_new
    z_ref[...] = acc


def _fused_forward(groups, sd, w_stack, *, n_groups, out_channels, b_mult,
                   cin_pad, cout_pad, alpha, v_leak, matmul_dtype):
    """Pad/stack inputs (single concat each), run the fused kernel, un-pad."""
    B = groups[0].shape[0]
    b_pad = _round_up(max(B, b_mult), b_mult)

    x_stack = jnp.stack([
        jnp.pad(g.astype(matmul_dtype),
                ((0, b_pad - B), (0, cin_pad - g.shape[1])))
        for g in groups])
    sd_stack = jnp.stack([
        jnp.pad(s.astype(jnp.float32),
                ((0, b_pad - B), (0, cout_pad - s.shape[1])))
        for s in sd])

    kernel = functools.partial(_dout_fused_kernel, n_groups=n_groups,
                               alpha=alpha, v_leak=v_leak)

    z_pad, sd_o_pad = pl.pallas_call(
        kernel,
        out_shape=(
            jax.ShapeDtypeStruct((b_pad, cout_pad), jnp.float32),            # z
            jax.ShapeDtypeStruct((n_groups, b_pad, cout_pad), jnp.float32),  # sd_o
        ),
        in_specs=[
            pl.BlockSpec(memory_space=pltpu.MemorySpace.VMEM),   # x_stack
            pl.BlockSpec(memory_space=pltpu.MemorySpace.VMEM),   # w_stack
            pl.BlockSpec(memory_space=pltpu.MemorySpace.VMEM),   # sd_stack
        ],
        out_specs=(
            pl.BlockSpec(memory_space=pltpu.MemorySpace.VMEM),   # z
            pl.BlockSpec(memory_space=pltpu.MemorySpace.VMEM),   # sd_o
        ),
        input_output_aliases={2: 1},   # reuse sd_stack buffer for sd_o
    )(x_stack, w_stack, sd_stack)

    z = z_pad[:B, :out_channels]
    sd_o = [sd_o_pad[i, :B, :out_channels] for i in range(n_groups)]
    return z, sd_o


# ----------------------------------------------------------------------------
# Wrapper mirroring DOutWrapper2
# ----------------------------------------------------------------------------
class DOutWrapper2Pallas:
    def __init__(self, in_channels, out_channels, lifparams, dt, *, key,
                 matmul_dtype=jnp.float32):
        self.in_channels = list(in_channels)
        self.out_channels = int(out_channels)
        self.dt = float(dt)
        self.tau_inv = float(lifparams["tau_inv"])
        self.v_leak = float(lifparams["v_leak"])

        n = len(self.in_channels)
        self.n_groups = n
        self.cin_pad = _round_up(max(self.in_channels), 128)
        self.cout_pad = _round_up(self.out_channels, 128)
        # bf16 packs (16,128) per vreg; f32 packs (8,128).
        self.b_mult = 16 if matmul_dtype == jnp.bfloat16 else 8

        # torch.nn.Linear default init: U(-1/sqrt(in), 1/sqrt(in)), weight
        # shape (Cout, Cin); stored pre-transposed as (Cin, Cout).
        self.weights_t = []
        keys = jax.random.split(key, n)
        for k, cin in zip(keys, self.in_channels):
            bound = 1.0 / math.sqrt(cin)
            w = jax.random.uniform(
                k, (self.out_channels, cin), jnp.float32,
                minval=-bound, maxval=bound)
            self.weights_t.append(w.T)  # (Cin, Cout)

        # Zero-padded stacked weights (n, Cin_pad, Cout_pad): padded rows/cols
        # are zero so they contribute nothing to the matmul.
        self.w_stack = jnp.stack([
            jnp.pad(wt, ((0, self.cin_pad - wt.shape[0]),
                         (0, self.cout_pad - wt.shape[1])))
            for wt in self.weights_t]).astype(matmul_dtype)

        alpha = self.dt * self.tau_inv
        self._forward = jax.jit(functools.partial(
            _fused_forward,
            n_groups=n, out_channels=self.out_channels, b_mult=self.b_mult,
            cin_pad=self.cin_pad, cout_pad=self.cout_pad,
            alpha=alpha, v_leak=self.v_leak, matmul_dtype=matmul_dtype))

    def forward(self, groups, sd):
        return self._forward(tuple(groups), tuple(sd), self.w_stack)


# ----------------------------------------------------------------------------
# Pure-JAX reference for sanity checking
# ----------------------------------------------------------------------------
def _reference(mod, groups, sd):
    n = len(groups)
    sd_o = [None] * n
    outs = []
    for i in range(n):
        y = groups[i] @ mod.weights_t[i]
        v = sd[i]
        v_new = v + mod.dt * mod.tau_inv * (mod.v_leak - v + y)
        sd_o[i] = v_new
        outs.append(v_new)
    z = outs[0]
    for i in range(1, n):
        z = z + outs[i] / n
    return z, sd_o


if __name__ == "__main__":
    key = jax.random.PRNGKey(0)
    k_w, k_g, k_s = jax.random.split(key, 3)

    batch = 4
    in_channels = [16, 24, 32]
    out_channels = 32
    lifparams = {"tau_inv": 5.0, "v_leak": 0.0}
    dt = 1e-2

    mod = DOutWrapper2Pallas(in_channels, out_channels, lifparams, dt, key=k_w)

    gkeys = jax.random.split(k_g, len(in_channels))
    skeys = jax.random.split(k_s, len(in_channels))
    groups = [
        jax.random.normal(gk, (batch, cin), jnp.float32)
        for gk, cin in zip(gkeys, in_channels)
    ]
    sd = [
        jax.random.normal(sk, (batch, out_channels), jnp.float32) * 0.1
        for sk in skeys
    ]

    z, sd_o = mod.forward(groups, sd)
    jax.block_until_ready(z)
    jax.block_until_ready(sd_o)

    z_ref, sd_o_ref = _reference(mod, groups, sd)
    assert jnp.allclose(z, z_ref, atol=1e-5, rtol=1e-5), "z mismatch"
    for a, b in zip(sd_o, sd_o_ref):
        assert jnp.allclose(a, b, atol=1e-5, rtol=1e-5), "state mismatch"

    print("KERNEL_OK")
</pallas_src>

<mosaic_0001>
module attributes {stable_mosaic.version = 11 : i64} {
  func.func @_dout_fused_kernel(%arg0: memref<3x8x128xf32, #tpu.memory_space<vmem>>, %arg1: memref<3x128x128xf32, #tpu.memory_space<vmem>>, %arg2: memref<3x8x128xf32, #tpu.memory_space<vmem>>, %arg3: memref<8x128xf32, #tpu.memory_space<vmem>>, %arg4: memref<3x8x128xf32, #tpu.memory_space<vmem>>) attributes {dimension_semantics = [], scalar_prefetch = 0 : i64, scratch_operands = 0 : i64, tpu.core_type = #tpu.core_type<tc>} {
    %c0 = arith.constant 0 : index
    %c0_0 = arith.constant 0 : index
    %c0_1 = arith.constant 0 : index
    %0 = vector.load %arg0[%c0, %c0_0, %c0_1] : memref<3x8x128xf32, #tpu.memory_space<vmem>>, vector<1x8x128xf32>
    %1 = vector.shape_cast %0 : vector<1x8x128xf32> to vector<8x128xf32>
    %c0_2 = arith.constant 0 : index
    %c0_3 = arith.constant 0 : index
    %c0_4 = arith.constant 0 : index
    %2 = vector.load %arg1[%c0_2, %c0_3, %c0_4] : memref<3x128x128xf32, #tpu.memory_space<vmem>>, vector<1x128x128xf32>
    %3 = vector.shape_cast %2 : vector<1x128x128xf32> to vector<128x128xf32>
    %cst = arith.constant dense<0.000000e+00> : vector<8x128xf32>
    %4 = tpu.matmul %1, %3, %cst {dimension_numbers = #tpu.dot_dimension_numbers<[1], [0], [0], [1], [0, 0, 1, 1], [], []>} : vector<8x128xf32>, vector<128x128xf32>, vector<8x128xf32> -> vector<8x128xf32>
    %c0_5 = arith.constant 0 : index
    %c0_6 = arith.constant 0 : index
    %c0_7 = arith.constant 0 : index
    %5 = vector.load %arg2[%c0_5, %c0_6, %c0_7] : memref<3x8x128xf32, #tpu.memory_space<vmem>>, vector<1x8x128xf32>
    %6 = vector.shape_cast %5 : vector<1x8x128xf32> to vector<8x128xf32>
    %cst_8 = arith.constant 0.000000e+00 : f32
    %7 = vector.broadcast %cst_8 : f32 to vector<8x128xf32>
    %8 = arith.subf %7, %6 : vector<8x128xf32>
    %9 = arith.addf %8, %4 : vector<8x128xf32>
    %cst_9 = arith.constant 5.000000e-02 : f32
    %10 = vector.broadcast %cst_9 : f32 to vector<8x128xf32>
    %11 = arith.mulf %10, %9 : vector<8x128xf32>
    %12 = arith.addf %6, %11 : vector<8x128xf32>
    %c0_10 = arith.constant 0 : index
    %c0_11 = arith.constant 0 : index
    %c0_12 = arith.constant 0 : index
    %13 = vector.load %arg4[%c0_10, %c0_11, %c0_12] : memref<3x8x128xf32, #tpu.memory_space<vmem>>, vector<1x8x128xf32>
    %14 = vector.shape_cast %13 : vector<1x8x128xf32> to vector<8x128xf32>
    %15 = vector.shape_cast %12 : vector<8x128xf32> to vector<1x8x128xf32>
    tpu.vector_store %arg4[%c0_10, %c0_11, %c0_12], %15 {strides = array<i32>} : memref<3x8x128xf32, #tpu.memory_space<vmem>>, vector<1x8x128xf32>,
    %c1 = arith.constant 1 : index
    %c0_13 = arith.constant 0 : index
    %c0_14 = arith.constant 0 : index
    %16 = vector.load %arg0[%c1, %c0_13, %c0_14] : memref<3x8x128xf32, #tpu.memory_space<vmem>>, vector<1x8x128xf32>
    %17 = vector.shape_cast %16 : vector<1x8x128xf32> to vector<8x128xf32>
    %c1_15 = arith.constant 1 : index
    %c0_16 = arith.constant 0 : index
    %c0_17 = arith.constant 0 : index
    %18 = vector.load %arg1[%c1_15, %c0_16, %c0_17] : memref<3x128x128xf32, #tpu.memory_space<vmem>>, vector<1x128x128xf32>
    %19 = vector.shape_cast %18 : vector<1x128x128xf32> to vector<128x128xf32>
    %cst_18 = arith.constant dense<0.000000e+00> : vector<8x128xf32>
    %20 = tpu.matmul %17, %19, %cst_18 {dimension_numbers = #tpu.dot_dimension_numbers<[1], [0], [0], [1], [0, 0, 1, 1], [], []>} : vector<8x128xf32>, vector<128x128xf32>, vector<8x128xf32> -> vector<8x128xf32>
    %c1_19 = arith.constant 1 : index
    %c0_20 = arith.constant 0 : index
    %c0_21 = arith.constant 0 : index
    %21 = vector.load %arg2[%c1_19, %c0_20, %c0_21] : memref<3x8x128xf32, #tpu.memory_space<vmem>>, vector<1x8x128xf32>
    %22 = vector.shape_cast %21 : vector<1x8x128xf32> to vector<8x128xf32>
    %cst_22 = arith.constant 0.000000e+00 : f32
    %23 = vector.broadcast %cst_22 : f32 to vector<8x128xf32>
    %24 = arith.subf %23, %22 : vector<8x128xf32>
    %25 = arith.addf %24, %20 : vector<8x128xf32>
    %cst_23 = arith.constant 5.000000e-02 : f32
    %26 = vector.broadcast %cst_23 : f32 to vector<8x128xf32>
    %27 = arith.mulf %26, %25 : vector<8x128xf32>
    %28 = arith.addf %22, %27 : vector<8x128xf32>
    %c1_24 = arith.constant 1 : index
    %c0_25 = arith.constant 0 : index
    %c0_26 = arith.constant 0 : index
    %29 = vector.load %arg4[%c1_24, %c0_25, %c0_26] : memref<3x8x128xf32, #tpu.memory_space<vmem>>, vector<1x8x128xf32>
    %30 = vector.shape_cast %29 : vector<1x8x128xf32> to vector<8x128xf32>
    %31 = vector.shape_cast %28 : vector<8x128xf32> to vector<1x8x128xf32>
    tpu.vector_store %arg4[%c1_24, %c0_25, %c0_26], %31 {strides = array<i32>} : memref<3x8x128xf32, #tpu.memory_space<vmem>>, vector<1x8x128xf32>,
    %cst_27 = arith.constant 0.333333343 : f32
    %32 = vector.broadcast %cst_27 : f32 to vector<8x128xf32>
    %33 = arith.mulf %32, %28 : vector<8x128xf32>
    %34 = arith.addf %12, %33 : vector<8x128xf32>
    %c2 = arith.constant 2 : index
    %c0_28 = arith.constant 0 : index
    %c0_29 = arith.constant 0 : index
    %35 = vector.load %arg0[%c2, %c0_28, %c0_29] : memref<3x8x128xf32, #tpu.memory_space<vmem>>, vector<1x8x128xf32>
    %36 = vector.shape_cast %35 : vector<1x8x128xf32> to vector<8x128xf32>
    %c2_30 = arith.constant 2 : index
    %c0_31 = arith.constant 0 : index
    %c0_32 = arith.constant 0 : index
    %37 = vector.load %arg1[%c2_30, %c0_31, %c0_32] : memref<3x128x128xf32, #tpu.memory_space<vmem>>, vector<1x128x128xf32>
    %38 = vector.shape_cast %37 : vector<1x128x128xf32> to vector<128x128xf32>
    %cst_33 = arith.constant dense<0.000000e+00> : vector<8x128xf32>
    %39 = tpu.matmul %36, %38, %cst_33 {dimension_numbers = #tpu.dot_dimension_numbers<[1], [0], [0], [1], [0, 0, 1, 1], [], []>} : vector<8x128xf32>, vector<128x128xf32>, vector<8x128xf32> -> vector<8x128xf32>
    %c2_34 = arith.constant 2 : index
    %c0_35 = arith.constant 0 : index
    %c0_36 = arith.constant 0 : index
    %40 = vector.load %arg2[%c2_34, %c0_35, %c0_36] : memref<3x8x128xf32, #tpu.memory_space<vmem>>, vector<1x8x128xf32>
    %41 = vector.shape_cast %40 : vector<1x8x128xf32> to vector<8x128xf32>
    %cst_37 = arith.constant 0.000000e+00 : f32
    %42 = vector.broadcast %cst_37 : f32 to vector<8x128xf32>
    %43 = arith.subf %42, %41 : vector<8x128xf32>
    %44 = arith.addf %43, %39 : vector<8x128xf32>
    %cst_38 = arith.constant 5.000000e-02 : f32
    %45 = vector.broadcast %cst_38 : f32 to vector<8x128xf32>
    %46 = arith.mulf %45, %44 : vector<8x128xf32>
    %47 = arith.addf %41, %46 : vector<8x128xf32>
    %c2_39 = arith.constant 2 : index
    %c0_40 = arith.constant 0 : index
    %c0_41 = arith.constant 0 : index
    %48 = vector.load %arg4[%c2_39, %c0_40, %c0_41] : memref<3x8x128xf32, #tpu.memory_space<vmem>>, vector<1x8x128xf32>
    %49 = vector.shape_cast %48 : vector<1x8x128xf32> to vector<8x128xf32>
    %50 = vector.shape_cast %47 : vector<8x128xf32> to vector<1x8x128xf32>
    tpu.vector_store %arg4[%c2_39, %c0_40, %c0_41], %50 {strides = array<i32>} : memref<3x8x128xf32, #tpu.memory_space<vmem>>, vector<1x8x128xf32>,
    %cst_42 = arith.constant 0.333333343 : f32
    %51 = vector.broadcast %cst_42 : f32 to vector<8x128xf32>
    %52 = arith.mulf %51, %47 : vector<8x128xf32>
    %53 = arith.addf %34, %52 : vector<8x128xf32>
    %c0_43 = arith.constant 0 : index
    %c0_44 = arith.constant 0 : index
    %54 = vector.load %arg3[%c0_43, %c0_44] : memref<8x128xf32, #tpu.memory_space<vmem>>, vector<8x128xf32>
    tpu.vector_store %arg3[%c0_43, %c0_44], %53 {strides = array<i32>} : memref<8x128xf32, #tpu.memory_space<vmem>>, vector<8x128xf32>,
    return
  }
}

</mosaic_0001>

<bundles_post_ra>
// kernel: _fused_forward.1
= control target key start
LH: loop header
LB: loop body
LE: loop exit
PB: predicated region body
PF: predicated region fallthrough
CT: control target
= control target key end

     0   :  { %10 = vsyncpa [#allocation3], 0  ;;  %s218_s18 = smov [#allocation2]   ;;  %s219_s20 = smov 128   ;;  %s279_s0 = inlined_call_operand.vmem [shape: f32[3,8,128], index: 0, kind: input, shape index: {}]   ;;  %s280_s1 = inlined_call_operand.hbm [shape: f32[3,128,128], index: 1, kind: input, shape index: {}]   ;;  %s281_s2 = inlined_call_operand.vmem [shape: f32[3,8,128], index: 2, kind: input, shape index: {}, may-alias: {2,4}]   ;;  %s282_s3 = inlined_call_operand.vmem [shape: f32[8,128], index: 3, kind: output, shape index: {0}]   ;;  %s283_s4 = inlined_call_operand.vmem [shape: f32[3,8,128], index: 4, kind: output, shape index: {1}, may-alias: {2,4}]  }
   0x1   :  { %s17_s17 = sshll.u32 %s280_s1, 4  ;;  %s19_s19 = sshll.u32 %s218_s18, 4  ;;  %s18_s17 = int_to_ptr.hbm [resolvable:$true] %s17_s17  ;;  %s20_s19 = int_to_ptr.vmem [resolvable:$true] %s19_s19 }
   0x2   :  { %s220_s21 = smov 8  }
   0x3   :  { %25 = dma.hbm_to_vmem [thread:$0]  %s18_s17, 6144, %s20_s19, [#allocation3], %s219_s20, %s219_s20, %s220_s21  }
   0x4   :  { %216 = dma.done.wait [#allocation3], 6144  }
   0x5   :  { %217 = vsyncadd [#allocation3], 4294961152  ;;  %v142_v0 = vld [vmem:[#allocation2 + $0x178] sm:$0xff]  ;;  %v141_v1 = vld [vmem:[#allocation2 + $0x170] sm:$0xff] }
   0x6   :  { %v93_v2 = vld [vmem:[#allocation2 + $0xf8] sm:$0xff]  ;;  %143 = vmatpush.msra.mxu2 %v142_v0  ;;  %v92_v4 = vld [vmem:[#allocation2 + $0xf0] sm:$0xff]  ;;  %v140_v5 = vld [vmem:[#allocation2 + $0x168] sm:$0xff] }
   0x7   :  { %94 = vmatpush.msra.mxu1 %v93_v2  ;;  %v48_v3 = vld [vmem:[#allocation2 + $0x78] sm:$0xff]  ;;  %v47_v6 = vld [vmem:[#allocation2 + $0x70] sm:$0xff]  ;;  %v91_v7 = vld [vmem:[#allocation2 + $0xe8] sm:$0xff] }
   0x8   :  { %49 = vmatpush.msra.mxu0 %v48_v3  ;;  %144 = vmatpush.msra.mxu2 %v141_v1  ;;  %v46_v8 = vld [vmem:[#allocation2 + $0x68] sm:$0xff]  ;;  %v139_v9 = vld [vmem:[#allocation2 + $0x160] sm:$0xff]  ;;  %v138_v12 = vld [vmem:[#allocation2 + $0x158] sm:$0xff] }
   0x9   :  { %95 = vmatpush.msra.mxu1 %v92_v4  ;;  %v90_v10 = vld [vmem:[#allocation2 + $0xe0] sm:$0xff]  ;;  %v89_v13 = vld [vmem:[#allocation2 + $0xd8] sm:$0xff]  ;;  %v137_v15 = vld [vmem:[#allocation2 + $0x150] sm:$0xff] }
   0xa   :  { %50 = vmatpush.msra.mxu0 %v47_v6  ;;  %145 = vmatpush.msra.mxu2 %v140_v5  ;;  %v45_v11 = vld [vmem:[#allocation2 + $0x60] sm:$0xff]  ;;  %v44_v14 = vld [vmem:[#allocation2 + $0x58] sm:$0xff]  ;;  %v88_v16 = vld [vmem:[#allocation2 + $0xd0] sm:$0xff] }
   0xb   :  { %96 = vmatpush.msra.mxu1 %v91_v7  ;;  %v43_v17 = vld [vmem:[#allocation2 + $0x50] sm:$0xff]  ;;  %v136_v18 = vld [vmem:[#allocation2 + $0x148] sm:$0xff]  ;;  %v135_v21 = vld [vmem:[#allocation2 + $0x140] sm:$0xff] }
   0xc   :  { %51 = vmatpush.msra.mxu0 %v46_v8  ;;  %146 = vmatpush.msra.mxu2 %v139_v9  ;;  %v87_v19 = vld [vmem:[#allocation2 + $0xc8] sm:$0xff]  ;;  %v86_v22 = vld [vmem:[#allocation2 + $0xc0] sm:$0xff]  ;;  %v134_v24 = vld [vmem:[#allocation2 + $0x138] sm:$0xff] }
   0xd   :  { %97 = vmatpush.msra.mxu1 %v90_v10  ;;  %v42_v20 = vld [vmem:[#allocation2 + $0x48] sm:$0xff]  ;;  %v41_v23 = vld [vmem:[#allocation2 + $0x40] sm:$0xff]  ;;  %v85_v25 = vld [vmem:[#allocation2 + $0xb8] sm:$0xff] }
   0xe   :  { %52 = vmatpush.msra.mxu0 %v45_v11  ;;  %147 = vmatpush.msra.mxu2 %v138_v12  ;;  %v40_v26 = vld [vmem:[#allocation2 + $0x38] sm:$0xff]  ;;  %v133_v27 = vld [vmem:[#allocation2 + $0x130] sm:$0xff]  ;;  %v132_v30 = vld [vmem:[#allocation2 + $0x128] sm:$0xff] }
   0xf   :  { %98 = vmatpush.msra.mxu1 %v89_v13  ;;  %v84_v28 = vld [vmem:[#allocation2 + $0xb0] sm:$0xff]  ;;  %v83_v31 = vld [vmem:[#allocation2 + $0xa8] sm:$0xff]  ;;  %v131_v33 = vld [vmem:[#allocation2 + $0x120] sm:$0xff] }
  0x10   :  { %53 = vmatpush.msra.mxu0 %v44_v14  ;;  %148 = vmatpush.msra.mxu2 %v137_v15  ;;  %v39_v29 = vld [vmem:[#allocation2 + $0x30] sm:$0xff]  ;;  %v38_v32 = vld [vmem:[#allocation2 + $0x28] sm:$0xff]  ;;  %v82_v34 = vld [vmem:[#allocation2 + $0xa0] sm:$0xff] }
  0x11   :  { %99 = vmatpush.msra.mxu1 %v88_v16  ;;  %v37_v35 = vld [vmem:[#allocation2 + $0x20] sm:$0xff]  ;;  %v130_v36 = vld [vmem:[#allocation2 + $0x118] sm:$0xff]  ;;  %v129_v39 = vld [vmem:[#allocation2 + $0x110] sm:$0xff] }
  0x12   :  { %54 = vmatpush.msra.mxu0 %v43_v17  ;;  %149 = vmatpush.msra.mxu2 %v136_v18  ;;  %v81_v37 = vld [vmem:[#allocation2 + $0x98] sm:$0xff]  ;;  %v80_v40 = vld [vmem:[#allocation2 + $0x90] sm:$0xff]  ;;  %v128_v42 = vld [vmem:[#allocation2 + $0x108] sm:$0xff] }
  0x13   :  { %100 = vmatpush.msra.mxu1 %v87_v19  ;;  %v36_v38 = vld [vmem:[#allocation2 + $0x18] sm:$0xff]  ;;  %v35_v41 = vld [vmem:[#allocation2 + $0x10] sm:$0xff]  ;;  %v79_v43 = vld [vmem:[#allocation2 + $0x88] sm:$0xff] }
  0x14   :  { %55 = vmatpush.msra.mxu0 %v42_v20  ;;  %150 = vmatpush.msra.mxu2 %v135_v21  ;;  %v34_v44 = vld [vmem:[#allocation2 + $0x8] sm:$0xff]  ;;  %v127_v45 = vld [vmem:[#allocation2 + $0x100] sm:$0xff]  ;;  %v186_v47 = vld [vmem:[%s279_s0 + $0x10] sm:$0xff] }
  0x15   :  { %101 = vmatpush.msra.mxu1 %v86_v22  ;;  %v78_v46 = vld [vmem:[#allocation2 + $0x80] sm:$0xff]  ;;  %v183_v48 = vld [vmem:[%s279_s0 + $0x8] sm:$0xff]  ;;  %v187_v56 = vld [vmem:[%s281_s2 + $0x10] sm:$0xff] }
  0x16   :  { %56 = vmatpush.msra.mxu0 %v41_v23  ;;  %151 = vmatpush.msra.mxu2 %v134_v24  ;;  %v33_v49 = vld [vmem:[#allocation2] sm:$0xff]  ;;  %v184_v51 = vld [vmem:[%s281_s2 + $0x8] sm:$0xff]  ;;  %v165_v61 = vsub.f32 0.0, %v187_v56 }
  0x17   :  { %102 = vmatpush.msra.mxu1 %v85_v25  ;;  %v32_v50 = vld [vmem:[%s279_s0] sm:$0xff]  ;;  %v116_v53 = vsub.f32 0.0, %v184_v51 }
  0x18   :  { %57 = vmatpush.msra.mxu0 %v40_v26  ;;  %152 = vmatpush.msra.mxu2 %v133_v27  ;;  %v69_v52 = vld [vmem:[%s281_s2] sm:$0xff] }
  0x19   :  { %103 = vmatpush.msra.mxu1 %v84_v28  ;;  %v70_v54 = vsub.f32 0.0, %v69_v52 }
  0x1a   :  { %58 = vmatpush.msra.mxu0 %v39_v29  ;;  %153 = vmatpush.msra.mxu2 %v132_v30 }
  0x1b   :  { %104 = vmatpush.msra.mxu1 %v83_v31 }
  0x1c   :  { %59 = vmatpush.msra.mxu0 %v38_v32  ;;  %154 = vmatpush.msra.mxu2 %v131_v33 }
  0x1d   :  { %105 = vmatpush.msra.mxu1 %v82_v34 }
  0x1e   :  { %60 = vmatpush.msra.mxu0 %v37_v35  ;;  %155 = vmatpush.msra.mxu2 %v130_v36 }
  0x1f   :  { %106 = vmatpush.msra.mxu1 %v81_v37 }
  0x20   :  { %61 = vmatpush.msra.mxu0 %v36_v38  ;;  %156 = vmatpush.msra.mxu2 %v129_v39 }
  0x21   :  { %107 = vmatpush.msra.mxu1 %v80_v40 }
  0x22   :  { %62 = vmatpush.msra.mxu0 %v35_v41  ;;  %157 = vmatpush.msra.mxu2 %v128_v42 }
  0x23   :  { %108 = vmatpush.msra.mxu1 %v79_v43 }
  0x24   :  { %63 = vmatpush.msra.mxu0 %v34_v44  ;;  %158 = vmatpush.msra.mxu2 %v127_v45 }
  0x25   :  { %109 = vmatpush.msra.mxu1 %v78_v46  ;;  %159 = vmatmul.f32.vlgmr.msra.gmra.mxu2 %v186_v47 }
  0x26   :  { %110 = vmatmul.f32.vlgmr.msra.gmra.mxu1 %v183_v48  ;;  %64 = vmatpush.msra.mxu0 %v33_v49 }
  0x27   :  { %65 = vmatmul.f32.vlgmr.msra.gmra.mxu0 %v32_v50 }
  0xa3   :  { %v111_v55 = vpop.f32.mrf.mxu1 }
  0xa4   :  { %v117_v57 = vadd.f32 %v116_v53, %v111_v55  ;;  %v66_v58 = vpop.f32.mrf.mxu0 }
  0xa5   :  { %v71_v60 = vadd.f32 %v70_v54, %v66_v58 }
  0xa6   :  { %v118_v59 = vmul.f32 0.05, %v117_v57 }
  0xa7   :  { %v72_v63 = vmul.f32 0.05, %v71_v60 }
  0xa8   :  { %v119_v62 = vadd.f32 %v184_v51, %v118_v59  ;;  %v160_v0 = vpop.f32.mrf.mxu2 }
  0xa9   :  { %v73_v2 = vadd.f32 %v72_v63, %v69_v52  ;;  %v166_v3 = vadd.f32 %v165_v61, %v160_v0 }
  0xaa   :  { %185 = vst [vmem:[%s283_s4 + $0x8] sm:$0xff] %v119_v62  ;;  %v122_v1 = vmul.f32 0.33333334, %v119_v62 }
  0xab   :  { %74 = vst [vmem:[%s283_s4] sm:$0xff] %v73_v2  ;;  %v167_v4 = vmul.f32 0.05, %v166_v3 }
  0xac   :  { %v123_v5 = vadd.f32 %v122_v1, %v73_v2 }
  0xad   :  { %v168_v6 = vadd.f32 %v187_v56, %v167_v4 }
  0xaf   :  { %188 = vst [vmem:[%s283_s4 + $0x10] sm:$0xff] %v168_v6  ;;  %v171_v7 = vmul.f32 0.33333334, %v168_v6 }
  0xb1   :  { %v172_v8 = vadd.f32 %v171_v7, %v123_v5 }
  0xb3   :  { %173 = vst [vmem:[%s282_s3] sm:$0xff] %v172_v8 }
  0xb4   :  { %182 = vsyncpa [#allocation3], 1 }

</bundles_post_ra>
